<compile_context>
chip_gen: v7x
topology: tpu7x:2x2x1
jax: 0.10.0
libtpu: 0.0.40
codegen_flags: <defaults>
</compile_context>

<pallas_src>
import functools

import jax
import jax.numpy as jnp
from jax.experimental import pallas as pl
from jax.experimental.pallas import tpu as pltpu


def _default_vmem_limit():
    """~75% of physical VMEM, capped at 96 MiB (v5e/v6e: 128 MiB, v7x: 64 MiB)."""
    cap = 64 * 1024 * 1024
    try:
        info = pltpu.get_tpu_info()
        cap = int(getattr(info, "vmem_capacity_bytes", cap) or cap)
    except Exception:
        pass
    return min(int(cap * 3 // 4), 96 * 1024 * 1024)


_VMEM_LIMIT = _default_vmem_limit()

# Tile caps (128-multiples -> map onto both the 4x128x128 v5e MXU and the
# 2x256x256 v6e/v7x MXU; clamped to the full dim at toy shapes).
_TM, _TN, _TK = 512, 512, 1024


def _choose_tile(dim, cap):
    """Return (tile, padded_dim). Prefers a 128-multiple divisor of dim; otherwise
    pads dim up to a multiple of cap (pad is sliced off / zero-contributes)."""
    if dim <= cap:
        return dim, dim
    t = (cap // 128) * 128
    while t >= 128:
        if dim % t == 0:
            return t, dim
        t -= 128
    padded = ((dim + cap - 1) // cap) * cap
    return cap, padded


def _pad_axis(a, axis, target):
    if a.shape[axis] == target:
        return a
    pads = [(0, 0)] * a.ndim
    pads[axis] = (0, target - a.shape[axis])
    return jnp.pad(a, pads)


# ----------------------------------------------------------------------------
# Dense (matmul + bias [+ activation]) with (M, N, K) grid and f32 accumulator
# ----------------------------------------------------------------------------

def _dense_kernel(x_ref, w_ref, b_ref, o_ref, acc_ref, *, activation):
    @pl.when(pl.program_id(2) == 0)
    def _init():
        acc_ref[...] = jnp.zeros_like(acc_ref)

    # bf16 MXU operands (inputs already bf16), f32 accumulation.
    acc_ref[...] += jnp.dot(x_ref[...], w_ref[...],
                            preferred_element_type=jnp.float32)

    @pl.when(pl.program_id(2) == pl.num_programs(2) - 1)
    def _finalize():
        y = acc_ref[...] + b_ref[...]
        if activation == "gelu":
            # TODO(synk): BERT default is exact (erf) gelu; tanh approximation used here.
            y = jax.nn.gelu(y, approximate=True)
        elif activation == "tanh":
            y = jnp.tanh(y)
        o_ref[...] = y.astype(o_ref.dtype)


def dense(x, w, b, activation="none"):
    """x:(M,K) bf16 @ w:(K,N) bf16 + b:(N,) f32 -> (M,N) bf16, tiled over (M,N,K)."""
    M, K = x.shape
    N = w.shape[1]
    tm, Mp = _choose_tile(M, _TM)
    tn, Np = _choose_tile(N, _TN)
    tk, Kp = _choose_tile(K, _TK)
    xp = _pad_axis(_pad_axis(x, 0, Mp), 1, Kp)
    wp = _pad_axis(_pad_axis(w, 0, Kp), 1, Np)
    bp = _pad_axis(b, 0, Np).reshape(1, Np)
    grid = (Mp // tm, Np // tn, Kp // tk)
    out = pl.pallas_call(
        functools.partial(_dense_kernel, activation=activation),
        out_shape=jax.ShapeDtypeStruct((Mp, Np), jnp.bfloat16),
        grid_spec=pltpu.PrefetchScalarGridSpec(
            num_scalar_prefetch=0,
            grid=grid,
            in_specs=[pl.BlockSpec((tm, tk), lambda i, j, k: (i, k)),
                      pl.BlockSpec((tk, tn), lambda i, j, k: (k, j)),
                      pl.BlockSpec((1, tn), lambda i, j, k: (0, j))],
            out_specs=pl.BlockSpec((tm, tn), lambda i, j, k: (i, j)),
            scratch_shapes=[pltpu.VMEM((tm, tn), jnp.float32)]),
        compiler_params=pltpu.CompilerParams(
            dimension_semantics=("parallel", "parallel", "arbitrary"),
            vmem_limit_bytes=_VMEM_LIMIT),
        cost_estimate=pl.CostEstimate(
            flops=2 * M * N * K,
            transcendentals=(M * N if activation != "none" else 0),
            bytes_accessed=M * K * 2 + K * N * 2 + M * N * 2),
    )(xp, wp, bp)
    if (Mp, Np) != (M, N):
        out = out[:M, :N]
    return out


# ----------------------------------------------------------------------------
# Dense + bias + residual-add + LayerNorm fused (N kept whole for the LN reduce)
# ----------------------------------------------------------------------------

def _dense_ln_kernel(x_ref, w_ref, b_ref, res_ref, g_ref, beta_ref, o_ref, acc_ref):
    @pl.when(pl.program_id(1) == 0)
    def _init():
        acc_ref[...] = jnp.zeros_like(acc_ref)

    acc_ref[...] += jnp.dot(x_ref[...], w_ref[...],
                            preferred_element_type=jnp.float32)

    @pl.when(pl.program_id(1) == pl.num_programs(1) - 1)
    def _finalize():
        y = acc_ref[...] + b_ref[...] + res_ref[...].astype(jnp.float32)
        mu = jnp.mean(y, axis=-1, keepdims=True)
        var = jnp.mean(jnp.square(y - mu), axis=-1, keepdims=True)
        o_ref[...] = ((y - mu) * jax.lax.rsqrt(var + 1e-12) * g_ref[...]
                      + beta_ref[...]).astype(o_ref.dtype)


def dense_ln(x, w, b, residual, gamma, beta):
    """LayerNorm(x @ w + b + residual); tiled over (M, K), hidden dim N whole."""
    M, K = x.shape
    N = w.shape[1]
    tm, Mp = _choose_tile(M, _TM)
    tk, Kp = _choose_tile(K, _TK)
    xp = _pad_axis(_pad_axis(x, 0, Mp), 1, Kp)
    wp = _pad_axis(w, 0, Kp)
    rp = _pad_axis(residual, 0, Mp)
    grid = (Mp // tm, Kp // tk)
    out = pl.pallas_call(
        _dense_ln_kernel,
        out_shape=jax.ShapeDtypeStruct((Mp, N), jnp.bfloat16),
        grid_spec=pltpu.PrefetchScalarGridSpec(
            num_scalar_prefetch=0,
            grid=grid,
            in_specs=[pl.BlockSpec((tm, tk), lambda i, k: (i, k)),
                      pl.BlockSpec((tk, N), lambda i, k: (k, 0)),
                      pl.BlockSpec((1, N), lambda i, k: (0, 0)),
                      pl.BlockSpec((tm, N), lambda i, k: (i, 0)),
                      pl.BlockSpec((1, N), lambda i, k: (0, 0)),
                      pl.BlockSpec((1, N), lambda i, k: (0, 0))],
            out_specs=pl.BlockSpec((tm, N), lambda i, k: (i, 0)),
            scratch_shapes=[pltpu.VMEM((tm, N), jnp.float32)]),
        compiler_params=pltpu.CompilerParams(
            dimension_semantics=("parallel", "arbitrary"),
            vmem_limit_bytes=_VMEM_LIMIT),
        cost_estimate=pl.CostEstimate(
            flops=2 * M * N * K,
            transcendentals=0,
            bytes_accessed=M * K * 2 + K * N * 2 + 2 * M * N * 2),
    )(xp, wp, b.reshape(1, N), rp, gamma.reshape(1, N), beta.reshape(1, N))
    if Mp != M:
        out = out[:M]
    return out


# ----------------------------------------------------------------------------
# Embedding-sum + LayerNorm (no matmul)
# ----------------------------------------------------------------------------

def _ln_kernel(x_ref, r_ref, g_ref, b_ref, o_ref):
    x = x_ref[...] + r_ref[...]
    mu = jnp.mean(x, axis=-1, keepdims=True)
    var = jnp.mean(jnp.square(x - mu), axis=-1, keepdims=True)
    o_ref[...] = ((x - mu) * jax.lax.rsqrt(var + 1e-12) * g_ref[...]
                  + b_ref[...]).astype(o_ref.dtype)


def layernorm_residual(x, residual, gamma, beta):
    M, H = x.shape
    tm, Mp = _choose_tile(M, _TM)
    xp = _pad_axis(x, 0, Mp)
    rp = _pad_axis(residual, 0, Mp)
    out = pl.pallas_call(
        _ln_kernel,
        out_shape=jax.ShapeDtypeStruct((Mp, H), jnp.bfloat16),
        grid_spec=pltpu.PrefetchScalarGridSpec(
            num_scalar_prefetch=0,
            grid=(Mp // tm,),
            in_specs=[pl.BlockSpec((tm, H), lambda i: (i, 0)),
                      pl.BlockSpec((tm, H), lambda i: (i, 0)),
                      pl.BlockSpec((1, H), lambda i: (0, 0)),
                      pl.BlockSpec((1, H), lambda i: (0, 0))],
            out_specs=pl.BlockSpec((tm, H), lambda i: (i, 0))),
        compiler_params=pltpu.CompilerParams(
            dimension_semantics=("parallel",),
            vmem_limit_bytes=_VMEM_LIMIT),
    )(xp, rp, gamma.reshape(1, H), beta.reshape(1, H))
    if Mp != M:
        out = out[:M]
    return out


# ----------------------------------------------------------------------------
# Attention: grid over (batch, head-group); lane-dense q/k/v blocks and a single
# lane-dense output store per grid step.  Scale is pre-folded into w_qkv (Q cols);
# softmax normalization is applied after the PV matmul.
# ----------------------------------------------------------------------------

def _attn_kernel(q_ref, k_ref, v_ref, bias_ref, o_ref, *, heads_per_group, head_dim):
    bias = bias_ref[0]                        # (1, S) additive key mask, broadcast over q rows
    outs = []
    for h in range(heads_per_group):          # unrolled; in-VMEM lane-window slices
        lo = h * head_dim
        q = q_ref[0, :, lo:lo + head_dim]     # bf16 (S, hd) -- Q already pre-scaled
        k = k_ref[0, :, lo:lo + head_dim]
        v = v_ref[0, :, lo:lo + head_dim]
        # q @ k^T without materializing a transpose (dot_general contracting dims).
        s = jax.lax.dot_general(q, k, (((1,), (1,)), ((), ())),
                                preferred_element_type=jnp.float32)
        s = s + bias
        m = jnp.max(s, axis=-1, keepdims=True)
        # TODO(synk): on v6e/v7x a bf16 exp roughly doubles EUP throughput (skip on v5e).
        p = jnp.exp(s - m)
        l = jnp.sum(p, axis=-1, keepdims=True)
        ctx = jnp.dot(p.astype(jnp.bfloat16), v, preferred_element_type=jnp.float32)
        ctx = ctx * pl.reciprocal(l, approx=True)        # normalize after PV: S*hd muls
        outs.append(ctx.astype(o_ref.dtype))
    o_ref[0] = outs[0] if len(outs) == 1 else jnp.concatenate(outs, axis=-1)


def attention(q, k, v, mask_bias, *, num_heads, head_dim):
    """q/k/v: (B, S, H) bf16; mask_bias: (B, 1, S) f32.  Grid: (batch, head_group)."""
    B, S, H = q.shape
    # Group heads so the q/k/v/output lane width is a 128-lane slab (or full H).
    hpg = 1
    for c in range(min(num_heads, max(1, 128 // head_dim)), 0, -1):
        if num_heads % c == 0:
            hpg = c
            break
    gw = hpg * head_dim
    G = num_heads // hpg
    # TODO(synk): for very long S on v7x (64 MiB VMEM) add flash-style q-row tiling.
    return pl.pallas_call(
        functools.partial(_attn_kernel, heads_per_group=hpg, head_dim=head_dim),
        out_shape=jax.ShapeDtypeStruct((B, S, H), jnp.bfloat16),
        grid_spec=pltpu.PrefetchScalarGridSpec(
            num_scalar_prefetch=0,
            grid=(B, G),
            in_specs=[pl.BlockSpec((1, S, gw), lambda b, g: (b, 0, g)),
                      pl.BlockSpec((1, S, gw), lambda b, g: (b, 0, g)),
                      pl.BlockSpec((1, S, gw), lambda b, g: (b, 0, g)),
                      pl.BlockSpec((1, 1, S), lambda b, g: (b, 0, 0))],
            out_specs=pl.BlockSpec((1, S, gw), lambda b, g: (b, 0, g))),
        compiler_params=pltpu.CompilerParams(
            dimension_semantics=("parallel", "parallel"),
            vmem_limit_bytes=_VMEM_LIMIT),
    )(q, k, v, mask_bias)


# ----------------------------------------------------------------------------
# Fused pooler (tanh on CLS) + classification head (lane-padded output)
# ----------------------------------------------------------------------------

def _head_kernel(cls_ref, pw_ref, pb_ref, cw_ref, cb_ref, o_ref):
    pooled = jnp.tanh(jnp.dot(cls_ref[...], pw_ref[...],
                              preferred_element_type=jnp.float32) + pb_ref[...])
    o_ref[...] = (jnp.dot(pooled.astype(jnp.bfloat16), cw_ref[...],
                          preferred_element_type=jnp.float32) + cb_ref[...])


def pooler_classifier(cls, pool_w, pool_b, cls_w_pad, cls_b_pad):
    B, H = cls.shape
    npad = cls_w_pad.shape[1]
    return pl.pallas_call(
        _head_kernel,
        out_shape=jax.ShapeDtypeStruct((B, npad), jnp.float32),
        compiler_params=pltpu.CompilerParams(vmem_limit_bytes=_VMEM_LIMIT),
    )(cls, pool_w, pool_b.reshape(1, H), cls_w_pad, cls_b_pad.reshape(1, npad))


# ----------------------------------------------------------------------------
# Deterministic parameter init (mini BERT-shaped config, scaled down)
# ----------------------------------------------------------------------------

def init_params(key, *, vocab, max_pos, hidden, num_layers, num_heads,
                intermediate, num_rels):
    def nrm(k, shape):
        return 0.02 * jax.random.normal(k, shape, dtype=jnp.float32)

    head_dim = hidden // num_heads
    q_scale = 1.0 / (head_dim ** 0.5)          # folded into the Q projection (free)
    npad = ((num_rels + 127) // 128) * 128     # lane-dense classifier width
    keys = iter(jax.random.split(key, 16 + 8 * num_layers))
    p = {
        "word_emb": nrm(next(keys), (vocab, hidden)),
        "pos_emb": nrm(next(keys), (max_pos, hidden)),
        "type_emb": nrm(next(keys), (2, hidden)),
        "emb_ln_g": jnp.ones((hidden,), jnp.float32),
        "emb_ln_b": jnp.zeros((hidden,), jnp.float32),
        "pool_w": nrm(next(keys), (hidden, hidden)).astype(jnp.bfloat16),
        "pool_b": jnp.zeros((hidden,), jnp.float32),
        "cls_w_pad": jnp.zeros((hidden, npad), jnp.float32)
                        .at[:, :num_rels].set(nrm(next(keys), (hidden, num_rels)))
                        .astype(jnp.bfloat16),
        "cls_b_pad": jnp.zeros((npad,), jnp.float32),
        "num_rels": num_rels,
        "layers": [],
    }
    for _ in range(num_layers):
        w_qkv = nrm(next(keys), (hidden, 3 * hidden))
        w_qkv = w_qkv.at[:, :hidden].multiply(q_scale)   # fold 1/sqrt(d) into Q cols
        b_qkv = jnp.zeros((3 * hidden,), jnp.float32)
        b_qkv = b_qkv.at[:hidden].multiply(q_scale)      # (zero bias; kept for clarity)
        layer = {
            "w_qkv": w_qkv.astype(jnp.bfloat16),
            "b_qkv": b_qkv,
            "wo": nrm(next(keys), (hidden, hidden)).astype(jnp.bfloat16),
            "bo": jnp.zeros((hidden,), jnp.float32),
            "ln1_g": jnp.ones((hidden,), jnp.float32),
            "ln1_b": jnp.zeros((hidden,), jnp.float32),
            "w1": nrm(next(keys), (hidden, intermediate)).astype(jnp.bfloat16),
            "b1": jnp.zeros((intermediate,), jnp.float32),
            "w2": nrm(next(keys), (intermediate, hidden)).astype(jnp.bfloat16),
            "b2": jnp.zeros((hidden,), jnp.float32),
            "ln2_g": jnp.ones((hidden,), jnp.float32),
            "ln2_b": jnp.zeros((hidden,), jnp.float32),
        }
        p["layers"].append(layer)
    return p


# ----------------------------------------------------------------------------
# Forward pass (mirrors ClassificationModel.forward)
# ----------------------------------------------------------------------------

def classification_model_forward(params, input_ids, input_mask, output_tokens_mask,
                                 *, num_heads):
    # output_tokens_mask is carried through (as in the reference module) but unused:
    # the forward pass only consumes the pooled CLS embedding.
    del output_tokens_mask
    B, S = input_ids.shape
    H = params["word_emb"].shape[1]
    head_dim = H // num_heads

    # Embeddings: gather is XLA glue; sum + LayerNorm is one Pallas kernel (bf16 out).
    word = params["word_emb"][input_ids].reshape(B * S, H)
    pos = params["pos_emb"][jnp.arange(S)]                      # (S, H)
    tok = params["type_emb"][0]                                 # (H,)  segment id 0
    res = jnp.broadcast_to(pos + tok, (B, S, H)).reshape(B * S, H)
    x = layernorm_residual(word, res, params["emb_ln_g"], params["emb_ln_b"])

    # Additive attention-mask bias: 0 where attended, -1e4 where padded.
    mask_bias = ((1.0 - input_mask.astype(jnp.float32)) * -10000.0).reshape(B, 1, S)

    for layer in params["layers"]:
        # (1) fused QKV projection, (2) head-group attention,
        # (3) output projection + residual + LN, (4) FFN w1+gelu, (5) FFN w2 + residual + LN.
        qkv = dense(x, layer["w_qkv"], layer["b_qkv"])                      # (B*S, 3H) bf16
        qkv = qkv.reshape(B, S, 3, H)
        q, k, v = qkv[:, :, 0], qkv[:, :, 1], qkv[:, :, 2]                  # (B, S, H) each
        ctx = attention(q, k, v, mask_bias, num_heads=num_heads, head_dim=head_dim)
        x = dense_ln(ctx.reshape(B * S, H), layer["wo"], layer["bo"],
                     x, layer["ln1_g"], layer["ln1_b"])
        h = dense(x, layer["w1"], layer["b1"], activation="gelu")
        x = dense_ln(h, layer["w2"], layer["b2"],
                     x, layer["ln2_g"], layer["ln2_b"])

    # Pooler (tanh(Linear(CLS))) + classification head, fused; lane-padded output.
    cls = x.reshape(B, S, H)[:, 0, :]
    logits_padded = pooler_classifier(cls, params["pool_w"], params["pool_b"],
                                      params["cls_w_pad"], params["cls_b_pad"])
    return logits_padded[:, :params["num_rels"]]


# ----------------------------------------------------------------------------
# Main
# ----------------------------------------------------------------------------

if __name__ == "__main__":
    B, S = 2, 8
    hidden, num_heads, num_layers, intermediate = 32, 2, 2, 64
    vocab, max_pos, num_rels = 100, 16, 5

    root = jax.random.PRNGKey(0)
    k_params, k_ids = jax.random.split(root)
    params = init_params(k_params, vocab=vocab, max_pos=max_pos, hidden=hidden,
                         num_layers=num_layers, num_heads=num_heads,
                         intermediate=intermediate, num_rels=num_rels)

    input_ids = jax.random.randint(k_ids, (B, S), 0, vocab, dtype=jnp.int32)
    input_mask = jnp.array([[1, 1, 1, 1, 1, 1, 1, 1],
                            [1, 1, 1, 1, 1, 0, 0, 0]], dtype=jnp.int32)
    output_tokens_mask = jnp.zeros((B, S), dtype=jnp.int32)

    logits = classification_model_forward(
        params, input_ids, input_mask, output_tokens_mask, num_heads=num_heads)
    logits = jax.block_until_ready(logits)

    assert logits.shape == (B, num_rels)
    assert bool(jnp.all(jnp.isfinite(logits)))
    print("KERNEL_OK")
</pallas_src>

<mosaic_0001>
module attributes {stable_mosaic.version = 11 : i64} {
  func.func @_ln_kernel(%arg0: i32, %arg1: memref<16x32xf32, #tpu.memory_space<vmem>>, %arg2: memref<16x32xf32, #tpu.memory_space<vmem>>, %arg3: memref<1x32xf32, #tpu.memory_space<vmem>>, %arg4: memref<1x32xf32, #tpu.memory_space<vmem>>, %arg5: memref<16x32xbf16, #tpu.memory_space<vmem>>) attributes {dimension_semantics = [#tpu.dimension_semantics<parallel>], iteration_bounds = array<i64: 1>, scalar_prefetch = 0 : i64, scratch_operands = 0 : i64, tpu.core_type = #tpu.core_type<tc>, window_params = [{transform_indices = @transform_0, window_bounds = array<i64: 16, 32>}, {transform_indices = @transform_1, window_bounds = array<i64: 16, 32>}, {pipeline_mode = #tpu.pipeline_mode<synchronous>, transform_indices = @transform_2, window_bounds = array<i64: 1, 32>}, {pipeline_mode = #tpu.pipeline_mode<synchronous>, transform_indices = @transform_3, window_bounds = array<i64: 1, 32>}, {transform_indices = @transform_4, window_bounds = array<i64: 16, 32>}]} {
    %c0 = arith.constant 0 : index
    %c0_0 = arith.constant 0 : index
    %0 = vector.load %arg1[%c0, %c0_0] : memref<16x32xf32, #tpu.memory_space<vmem>>, vector<16x32xf32>
    %c0_1 = arith.constant 0 : index
    %c0_2 = arith.constant 0 : index
    %1 = vector.load %arg2[%c0_1, %c0_2] : memref<16x32xf32, #tpu.memory_space<vmem>>, vector<16x32xf32>
    %2 = arith.addf %0, %1 : vector<16x32xf32>
    %cst = arith.constant dense<0.000000e+00> : vector<16xf32>
    %3 = vector.multi_reduction <add>, %2, %cst [1] : vector<16x32xf32> to vector<16xf32>
    %4 = vector.shape_cast %3 : vector<16xf32> to vector<16x1xf32>
    %cst_3 = arith.constant 3.200000e+01 : f32
    %5 = vector.broadcast %cst_3 : f32 to vector<16x1xf32>
    %6 = arith.divf %4, %5 : vector<16x1xf32>
    %7 = vector.broadcast %6 : vector<16x1xf32> to vector<16x32xf32>
    %8 = arith.subf %2, %7 : vector<16x32xf32>
    %9 = arith.mulf %8, %8 : vector<16x32xf32>
    %cst_4 = arith.constant dense<0.000000e+00> : vector<16xf32>
    %10 = vector.multi_reduction <add>, %9, %cst_4 [1] : vector<16x32xf32> to vector<16xf32>
    %11 = vector.shape_cast %10 : vector<16xf32> to vector<16x1xf32>
    %cst_5 = arith.constant 3.200000e+01 : f32
    %12 = vector.broadcast %cst_5 : f32 to vector<16x1xf32>
    %13 = arith.divf %11, %12 : vector<16x1xf32>
    %14 = vector.broadcast %6 : vector<16x1xf32> to vector<16x32xf32>
    %15 = arith.subf %2, %14 : vector<16x32xf32>
    %cst_6 = arith.constant 9.99999996E-13 : f32
    %16 = vector.broadcast %cst_6 : f32 to vector<16x1xf32>
    %17 = arith.addf %13, %16 : vector<16x1xf32>
    %18 = math.rsqrt %17 : vector<16x1xf32>
    %19 = vector.broadcast %18 : vector<16x1xf32> to vector<16x32xf32>
    %20 = arith.mulf %15, %19 : vector<16x32xf32>
    %c0_7 = arith.constant 0 : index
    %c0_8 = arith.constant 0 : index
    %21 = vector.load %arg3[%c0_7, %c0_8] : memref<1x32xf32, #tpu.memory_space<vmem>>, vector<1x32xf32>
    %22 = vector.broadcast %21 : vector<1x32xf32> to vector<16x32xf32>
    %23 = arith.mulf %20, %22 : vector<16x32xf32>
    %c0_9 = arith.constant 0 : index
    %c0_10 = arith.constant 0 : index
    %24 = vector.load %arg4[%c0_9, %c0_10] : memref<1x32xf32, #tpu.memory_space<vmem>>, vector<1x32xf32>
    %25 = vector.broadcast %24 : vector<1x32xf32> to vector<16x32xf32>
    %26 = arith.addf %23, %25 : vector<16x32xf32>
    %27 = arith.truncf %26 : vector<16x32xf32> to vector<16x32xbf16>
    %c0_11 = arith.constant 0 : index
    %c0_12 = arith.constant 0 : index
    %28 = vector.load %arg5[%c0_11, %c0_12] : memref<16x32xbf16, #tpu.memory_space<vmem>>, vector<16x32xbf16>
    tpu.vector_store %arg5[%c0_11, %c0_12], %27 {strides = array<i32>} : memref<16x32xbf16, #tpu.memory_space<vmem>>, vector<16x32xbf16>,
    return
  }
  func.func @transform_0(%arg0: i32) -> (i32, i32) {
    %c0_i32 = arith.constant 0 : i32
    %c0_i32_0 = arith.constant 0 : i32
    return %arg0, %c0_i32 : i32, i32
  }
  func.func @transform_1(%arg0: i32) -> (i32, i32) {
    %c0_i32 = arith.constant 0 : i32
    %c0_i32_0 = arith.constant 0 : i32
    return %arg0, %c0_i32 : i32, i32
  }
  func.func @transform_2(%arg0: i32) -> (i32, i32) {
    %c0_i32 = arith.constant 0 : i32
    %c0_i32_0 = arith.constant 0 : i32
    %c0_i32_1 = arith.constant 0 : i32
    return %c0_i32, %c0_i32_0 : i32, i32
  }
  func.func @transform_3(%arg0: i32) -> (i32, i32) {
    %c0_i32 = arith.constant 0 : i32
    %c0_i32_0 = arith.constant 0 : i32
    %c0_i32_1 = arith.constant 0 : i32
    return %c0_i32, %c0_i32_0 : i32, i32
  }
  func.func @transform_4(%arg0: i32) -> (i32, i32) {
    %c0_i32 = arith.constant 0 : i32
    %c0_i32_0 = arith.constant 0 : i32
    return %arg0, %c0_i32 : i32, i32
  }
}

</mosaic_0001>

<bundles_post_ra>
// kernel: tpu_custom_call.1
= control target key start
LH: loop header
LB: loop body
LE: loop exit
PB: predicated region body
PF: predicated region fallthrough
CT: control target
= control target key end

     0   :  { %9 = vsyncpa [#allocation3], 0  ;;  %s294_s0 = inlined_call_operand.hbm [shape: f32[16,32], index: 0, kind: input, shape index: {}]   ;;  %s295_s1 = inlined_call_operand.hbm [shape: f32[16,32], index: 1, kind: input, shape index: {}]   ;;  %s296_s2 = inlined_call_operand.vmem [shape: f32[1,32], index: 2, kind: input, shape index: {}]   ;;  %s297_s3 = inlined_call_operand.vmem [shape: f32[1,32], index: 3, kind: input, shape index: {}]   ;;  %s298_s4 = inlined_call_operand.hbm [shape: bf16[16,32], index: 4, kind: output, shape index: {}]  }
   0x1   :  { %10 = vsyncpa [#allocation6], 0 }
   0x2   :  { %11 = vsyncpa [#allocation4], 0  ;;  %s216_s15 = smov [#allocation2]   ;;  %s144_s19 = scalar_lea.hbm %s294_s0, 256 }
   0x3   :  { %s17_s16 = sshll.u32 %s216_s15, 4  ;;  %p145_p0 = scmp.ne.s32.totalorder %s294_s0, %s144_s19  ;;  %s18_s16 = int_to_ptr.vmem [resolvable:$true] %s17_s16 }
   0x4   :  { %p148_p1 = scmp.lt.u32.totalorder %s144_s19, %s294_s0 }
   0x6   :  { %p150_p2 = pnand %p148_p1, %p145_p0 }
   0x8   :  { %153 = shalt.err (!%p150_p2)
}
   0x9   :  { %s154_s24 = scalar_lea.vmem %s18_s16, 256  ;;  %p159_p4 = scmp.lt.s32.totalorder %s18_s16, %s18_s16 }
   0xa   :  { %p155_p3 = scmp.ne.s32.totalorder %s18_s16, %s154_s24  ;;  %p160_p5 = scmp.lt.s32.totalorder %s154_s24, %s154_s24 }
   0xc   :  { %p161_p6 = por %p160_p5, %p159_p4 }
   0xe   :  { %p162_p7 = pnand %p161_p6, %p155_p3 }
  0x10   :  { %165 = shalt.err (!%p162_p7)
}
  0x11   :  { %s217_s25 = smov 128   ;;  %s218_s26 = smov 8  }
  0x12   :  { %23 = dma.hbm_to_vmem [thread:$0]  %s294_s0, 256, %s18_s16, [#allocation3], %s217_s25, %s217_s25, %s218_s26  }
  0x13   :  { %s219_s29 = smov [#allocation5]   ;;  %s166_s7 = scalar_lea.hbm %s295_s1, 256 }
  0x14   :  { %s29_s30 = sshll.u32 %s219_s29, 4  ;;  %p167_p8 = scmp.ne.s32.totalorder %s295_s1, %s166_s7  ;;  %s30_s30 = int_to_ptr.vmem [resolvable:$true] %s29_s30 }
  0x15   :  { %p170_p9 = scmp.lt.u32.totalorder %s166_s7, %s295_s1 }
  0x17   :  { %p172_p10 = pnand %p170_p9, %p167_p8 }
  0x19   :  { %175 = shalt.err (!%p172_p10)
}
  0x1a   :  { %s176_s12 = scalar_lea.vmem %s30_s30, 256  ;;  %p181_p12 = scmp.lt.s32.totalorder %s30_s30, %s30_s30 }
  0x1b   :  { %p177_p11 = scmp.ne.s32.totalorder %s30_s30, %s176_s12  ;;  %p182_p13 = scmp.lt.s32.totalorder %s176_s12, %s176_s12 }
  0x1d   :  { %p183_p0 = por %p182_p13, %p181_p12 }
  0x1f   :  { %p184_p1 = pnand %p183_p0, %p177_p11 }
  0x21   :  { %187 = shalt.err (!%p184_p1)
}
  0x22   :  { %35 = dma.hbm_to_vmem [thread:$0]  %s295_s1, 256, %s30_s30, [#allocation6], %s217_s25, %s217_s25, %s218_s26  }
  0x23   :  { %210 = dma.done.wait [#allocation3], 256  }
  0x24   :  { %211 = vsyncadd [#allocation3], 4294967040 }
  0x25   :  { %212 = dma.done.wait [#allocation6], 256  }
  0x26   :  { %213 = vsyncadd [#allocation6], 4294967040  ;;  %v46_v0 = vld [vmem:[#allocation2] sm:$0xff]  ;;  %v48_v1 = vld [vmem:[#allocation5] sm:$0xff]  ;;  %vm52_vm0 = vcmask 261120   ;;  %vm106_vm1 = vcmask 257024  }
  0x27   :  { %v47_v2 = vld [vmem:[#allocation2 + $0x8] sm:$0xff]  ;;  %v50_v3 = vadd.f32 %v48_v1, %v46_v0  ;;  %v49_v4 = vld [vmem:[#allocation5 + $0x8] sm:$0xff]  ;;  %v127_v25 = vld [vmem:[%s296_s2] ss:$0 sm:$0xff]  ;;  %s220_s17 = smov [#allocation7]  }
  0x28   :  { %v51_v5 = vadd.f32 %v49_v4, %v47_v2  ;;  %v128_v27 = vld [vmem:[%s297_s3] ss:$0 sm:$0xff]  ;;  %s114_s18 = sshll.u32 %s220_s17, 4  ;;  %s115_s18 = int_to_ptr.vmem [resolvable:$true] %s114_s18 }
  0x29   :  { %v53_v6 = vsel %vm52_vm0, %v50_v3, 0.0  ;;  %s188_s2 = scalar_lea.vmem %s115_s18, 128  ;;  %p193_p3 = scmp.lt.s32.totalorder %s115_s18, %s115_s18 }
  0x2a   :  { %54 = vadd.xlane.f32.xlu0 %v53_v6  ;;  %v56_v7 = vsel %vm52_vm0, %v51_v5, 0.0  ;;  %p189_p2 = scmp.ne.s32.totalorder %s115_s18, %s188_s2  ;;  %p194_p4 = scmp.lt.s32.totalorder %s188_s2, %s188_s2 }
  0x2c   :  { %p195_p5 = por %p194_p4, %p193_p3 }
  0x2e   :  { %57 = vadd.xlane.f32.xlu0 %v56_v7  ;;  %p196_p6 = pnand %p195_p5, %p189_p2 }
  0xb7   :  { %v55_v8 = vpop.xlane.xlu0 %54 }
  0xb8   :  { %v60_v9 = vmul.f32 0.03125, %v55_v8 }
  0xba   :  { %v62_v10 = vsub.f32 %v50_v3, %v60_v9 }
  0xbb   :  { %v58_v11 = vpop.xlane.xlu0 %57 }
  0xbc   :  { %v61_v12 = vmul.f32 0.03125, %v58_v11  ;;  %v64_v13 = vmul.f32 %v62_v10, %v62_v10 }
  0xbe   :  { %v63_v14 = vsub.f32 %v51_v5, %v61_v12  ;;  %v66_v15 = vsel %vm52_vm0, %v64_v13, 0.0 }
  0xbf   :  { %67 = vadd.xlane.f32.xlu1 %v66_v15 }
  0xc0   :  { %v65_v16 = vmul.f32 %v63_v14, %v63_v14 }
  0xc2   :  { %v69_v17 = vsel %vm52_vm0, %v65_v16, 0.0 }
  0xc3   :  { %70 = vadd.xlane.f32.xlu1 %v69_v17 }
 0x14c   :  { %v68_v18 = vpop.xlane.xlu1 %67 }
 0x14d   :  { %v72_v19 = vmul.f32 0.03125, %v68_v18 }
 0x14f   :  { %v74_v20 = vadd.f32 1e-12, %v72_v19 }
 0x150   :  { %v71_v21 = vpop.xlane.xlu1 %70 }
 0x151   :  { %140 = vrsqrt.f32 %v74_v20  ;;  %v73_v22 = vmul.f32 0.03125, %v71_v21 }
 0x153   :  { %v75_v23 = vadd.f32 1e-12, %v73_v22 }
 0x155   :  { %142 = vrsqrt.f32 %v75_v23 }
 0x15b   :  { %v141_v24 = vpop.eup %140 }
 0x15c   :  { %v78_v26 = vmul.f32 %v141_v24, %v62_v10 }
 0x15e   :  { %v87_v28 = vmul.f32 %v127_v25, %v78_v26 }
 0x15f   :  { %v143_v29 = vpop.eup %142 }
 0x160   :  { %v79_v30 = vmul.f32 %v143_v29, %v63_v14  ;;  %v96_v31 = vadd.f32 %v128_v27, %v87_v28 }
 0x162   :  { %v88_v32 = vmul.f32 %v127_v25, %v79_v30  ;;  %v131_v33 = vpack.c.bf16 %v96_v31, %v96_v31 }
 0x164   :  { %v97_v34 = vadd.f32 %v128_v27, %v88_v32  ;;  %107 = vst.msk [vmem:[#allocation7] sm:$0xf] %vm106_vm1, %v131_v33 }
 0x166   :  { %v132_v35 = vpack.c.bf16 %v97_v34, %v97_v34 }
 0x168   :  { %108 = vst.msk [vmem:[#allocation7 + $0x4] sm:$0xf] %vm106_vm1, %v132_v35 }
 0x169   :  { %199 = shalt.err (!%p196_p6)
}
 0x16a   :  { %s200_s20 = scalar_lea.hbm %s298_s4, 128 }
 0x16b   :  { %p201_p7 = scmp.ne.s32.totalorder %s298_s4, %s200_s20  ;;  %p204_p8 = scmp.lt.u32.totalorder %s200_s20, %s298_s4 }
 0x16d   :  { %p206_p9 = pnand %p204_p8, %p201_p7 }
 0x16f   :  { %209 = shalt.err (!%p206_p9)
}
 0x170   :  { %s221_s25 = smov 64   ;;  %s222_s26 = smov 4  }
 0x171   :  { %120 = dma.vmem_to_hbm [thread:$0]  %s115_s18, 128, %s298_s4, [#allocation4], %s221_s25, %s221_s25, %s222_s26  }
 0x172   :  { %214 = dma.done.wait [#allocation4], 128  }
 0x173   :  { %215 = vsyncadd [#allocation4], 4294967168 }
 0x174   :  { %124 = vsyncpa [#allocation3], 1 }
 0x175   :  { %125 = vsyncpa [#allocation6], 1 }
 0x176   :  { %126 = vsyncpa [#allocation4], 1 }

</bundles_post_ra>
